<compile_context>
chip_gen: v7x
topology: tpu7x:2x2x1
jax: 0.10.0
libtpu: 0.0.40
codegen_flags: <defaults>
</compile_context>

<pallas_src>
import math
import numpy as np
import jax
import jax.numpy as jnp
from jax.experimental import pallas as pl
from jax.experimental.pallas import tpu as pltpu


# ---------------------------------------------------------------------------
# Per-trial fused kernel: Gaussian expected log-lik + path-KL quadrature.
# Grid axis 0 = trial ("parallel").
# ---------------------------------------------------------------------------
def _gpsde_trial_kernel(
    xe_ref,      # (1, KA, T)   [m ; S_flat ; 1] for this trial (KA = K + K*K + 1)
    y_ref,       # (1, D, T)    observations, time on lanes
    p_ref,       # (2D, KA)     fused readout matrix [[C, 0, d], [0, W, 0]]
    logvar_ref,  # (D, 1)       observation log-variances (column)
    mq_ref,      # (1, K, Q)    variational means at quadrature nodes
    sq_ref,      # (1, K, K, Q) variational covariances at quadrature nodes
    aq_ref,      # (1, K, K, Q) posterior drift matrices  g(x) = -A x + b
    bq_ref,      # (1, K, Q)    posterior drift offsets
    f3_ref,      # (K, K, 1)    prior drift matrix F
    f0_ref,      # (K, 1)       prior drift offset
    w_ref,       # (1, Q)       Gauss-Legendre weights on [0, trLen]
    ell_ref,     # (1, 1, 1) out: per-trial expected log-likelihood
    kl_ref,      # (1, 1, 1) out: per-trial path KL
):
    # ---------------- expected log-likelihood -------------------------------
    X = xe_ref[0]              # (KA, T)
    Y = y_ref[0]               # (D, T)
    P = p_ref[...]             # (2D, KA)
    logvar = logvar_ref[...]   # (D, 1)

    D, T = Y.shape

    # One fused MXU matmul: rows [0:D) -> mu = C m + d, rows [D:2D) -> diag(C S C^T)
    mc = jnp.dot(P, X, preferred_element_type=jnp.float32)   # (2D, T)
    mu = mc[:D, :]
    cdiag = mc[D:, :]

    inv_var = jnp.exp(-logvar)                                # (D, 1)  EUP, no divide
    resid = Y - mu
    e = (resid * resid + cdiag) * inv_var                     # (D, T)

    c0 = -0.5 * D * math.log(2.0 * math.pi) - 0.5 * jnp.sum(logvar)
    ell_ref[0] = T * c0 - 0.5 * jnp.sum(e, keepdims=True)     # (1, 1)

    # ---------------- prior drift + path-KL quadrature ----------------------
    mq = mq_ref[0]             # (K, Q)
    S3 = sq_ref[0]             # (K, K, Q)
    A3 = aq_ref[0]             # (K, K, Q)
    bq = bq_ref[0]             # (K, Q)
    F3 = f3_ref[...]           # (K, K, 1)
    f0 = f0_ref[...]           # (K, 1)
    w = w_ref[...]             # (1, Q)

    # f(x) - g(x) = G x + h   with  G = F + A,  h = f0 - b
    G3 = F3 + A3                                              # (K, K, Q)
    h = f0 - bq                                               # (K, Q)

    # ||G m + h||^2  (VPU broadcast-multiply + sublane reduce)
    Gm = jnp.sum(G3 * mq[None, :, :], axis=1)                 # (K, Q): sum_b G[a,b] m[b]
    u = Gm + h
    quad = jnp.sum(u * u, axis=0, keepdims=True)              # (1, Q)

    # tr(G S G^T) = <G^T G, S>  (holds for any S, no symmetry assumption)
    GtG = jnp.sum(G3[:, :, None, :] * G3[:, None, :, :], axis=0)          # (K, K, Q)
    tr_q = jnp.sum(jnp.sum(GtG * S3, axis=0), axis=0, keepdims=True)      # (1, Q)

    integrand = 0.5 * (quad + tr_q)                           # (1, Q)
    kl_ref[0] = jnp.sum(integrand * w, keepdims=True)         # (1, 1)


# ---------------------------------------------------------------------------
# Pure forward function (jit-compiled); layout plumbing is plain-JAX glue.
# ---------------------------------------------------------------------------
def _forward_fn(m_sp, S_sp, m_qu, S_qu, A_qu, b_qu, Y, C, d, logvar, F, f0, wleg):
    R, T = m_sp.shape[0], m_sp.shape[1]
    Q = m_qu.shape[1]
    D = Y.shape[-1]
    K = C.shape[1]
    KA = K + K * K + 1
    f32 = jnp.float32

    # Lane-dense (time / node last) layouts, built once per forward call.
    m_T = jnp.transpose(m_sp.reshape(R, T, K), (0, 2, 1))                 # (R, K, T)
    S_T = jnp.transpose(S_sp.reshape(R, T, K * K), (0, 2, 1))             # (R, K*K, T)
    XE = jnp.concatenate([m_T, S_T, jnp.ones((R, 1, T), f32)], axis=1)    # (R, KA, T)
    Y_T = jnp.transpose(Y, (0, 2, 1))                                     # (R, D, T)

    # Fused readout matrix: [[C, 0, d], [0, W, 0]], W[j, a*K+b] = C[j,a]*C[j,b]
    W = (C[:, :, None] * C[:, None, :]).reshape(D, K * K)
    P = jnp.concatenate(
        [jnp.concatenate([C, jnp.zeros((D, K * K), f32), d.reshape(D, 1)], axis=1),
         jnp.concatenate([jnp.zeros((D, K), f32), W, jnp.zeros((D, 1), f32)], axis=1)],
        axis=0)                                                           # (2D, KA)

    mq_T = jnp.transpose(m_qu.reshape(R, Q, K), (0, 2, 1))                # (R, K, Q)
    bq_T = jnp.transpose(b_qu.reshape(R, Q, K), (0, 2, 1))                # (R, K, Q)
    Sq_T = jnp.transpose(S_qu, (0, 2, 3, 1))                              # (R, K, K, Q)
    Aq_T = jnp.transpose(A_qu, (0, 2, 3, 1))                              # (R, K, K, Q)

    ell_col, kl_col = pl.pallas_call(
        _gpsde_trial_kernel,
        grid=(R,),
        in_specs=[
            pl.BlockSpec((1, KA, T), lambda r: (r, 0, 0)),          # XE
            pl.BlockSpec((1, D, T), lambda r: (r, 0, 0)),           # Y
            pl.BlockSpec((2 * D, KA), lambda r: (0, 0)),            # P (shared)
            pl.BlockSpec((D, 1), lambda r: (0, 0)),                 # logvar
            pl.BlockSpec((1, K, Q), lambda r: (r, 0, 0)),           # m_qu
            pl.BlockSpec((1, K, K, Q), lambda r: (r, 0, 0, 0)),     # S_qu
            pl.BlockSpec((1, K, K, Q), lambda r: (r, 0, 0, 0)),     # A_qu
            pl.BlockSpec((1, K, Q), lambda r: (r, 0, 0)),           # b_qu
            pl.BlockSpec((K, K, 1), lambda r: (0, 0, 0)),           # F
            pl.BlockSpec((K, 1), lambda r: (0, 0)),                 # f0
            pl.BlockSpec((1, Q), lambda r: (0, 0)),                 # GL weights
        ],
        out_specs=(pl.BlockSpec((1, 1, 1), lambda r: (r, 0, 0)),
                   pl.BlockSpec((1, 1, 1), lambda r: (r, 0, 0))),
        out_shape=(jax.ShapeDtypeStruct((R, 1, 1), f32),
                   jax.ShapeDtypeStruct((R, 1, 1), f32)),
        compiler_params=pltpu.CompilerParams(dimension_semantics=("parallel",)),
    )(XE, Y_T, P, logvar.reshape(D, 1), mq_T, Sq_T, Aq_T, bq_T,
      F.reshape(K, K, 1), f0.reshape(K, 1), wleg)

    ell_sum = jnp.sum(ell_col)          # matches torch's ell.sum()
    kld = jnp.sum(kl_col)               # total path KL over trials

    # Parameter log-prior terms returned by the sub-modules (plain-JAX glue).
    # TODO(synk): the torch sub-modules' exact priors are not defined in models.py;
    #             standard-normal parameter priors are used here.
    prior_trans = -0.5 * (jnp.sum(F ** 2) + jnp.sum(f0 ** 2))
    prior_map = -0.5 * (jnp.sum(C ** 2) + jnp.sum(d ** 2))
    return ell_sum, kld, prior_trans, prior_map


# ---------------------------------------------------------------------------
# Module wrapper mirroring GPSDEmodel
# ---------------------------------------------------------------------------
class GPSDEmodelPallas:
    def __init__(self, nLatent, nOut, nTrials, nObsPerTrial, nLeg, trLen, key):
        self.nLatent = nLatent
        self.nTrials = nTrials
        k = jax.random.split(key, 5)

        # outputMapping parameters (linear-Gaussian readout)
        self.C = jax.random.normal(k[0], (nOut, nLatent), jnp.float32) / jnp.sqrt(nLatent)
        self.d = 0.1 * jax.random.normal(k[1], (1, nOut), jnp.float32)

        # likelihood parameters + fixed observations (the torch `like` stores Y internally)
        self.logvar = jnp.full((1, nOut), -1.0, jnp.float32)
        self.Y = jax.random.normal(k[2], (nTrials, nObsPerTrial, nOut), jnp.float32)

        # transfunc parameters (linear prior drift f(x) = F x + f0)
        self.F = (-jnp.eye(nLatent, dtype=jnp.float32)
                  + 0.1 * jax.random.normal(k[3], (nLatent, nLatent), jnp.float32))
        self.f0 = 0.1 * jax.random.normal(k[4], (1, nLatent), jnp.float32)

        # KullbackLeibler(trLen, nLeg): Gauss-Legendre nodes/weights on [0, trLen]
        xx, ww = np.polynomial.legendre.leggauss(nLeg)
        self.xxLeg = jnp.tile(jnp.asarray(0.5 * trLen * (xx + 1.0), jnp.float32)[None, :],
                              (nTrials, 1))                                 # (R, Q) nodes
        self.wwLeg = jnp.asarray(0.5 * trLen * ww, jnp.float32)[None, :]    # (1, Q) weights

        # initialiseInitialState()
        var_init = 1.0
        self.initialMean = jnp.zeros((nTrials, 1, nLatent), jnp.float32)
        self.initialCov = var_init * jnp.tile(jnp.eye(nLatent, dtype=jnp.float32),
                                              (nTrials, 1, 1))

        self._fwd = jax.jit(_forward_fn)

    def forward(self, m_sp, S_sp, m_qu, S_qu, A_qu, b_qu):
        return self._fwd(m_sp, S_sp, m_qu, S_qu, A_qu, b_qu,
                         self.Y, self.C, self.d, self.logvar,
                         self.F, self.f0, self.wwLeg)


if __name__ == "__main__":
    key = jax.random.PRNGKey(0)
    R, K, D, T = 2, 4, 16, 8          # nTrials, nLatent, nOutputDims, nSampleTimes
    nLeg = 8                          # quadrature nodes (small; module default is 50)
    trLen = 1.0

    keys = jax.random.split(key, 8)

    # Variational marginals at the sample times (stacked torch lists)
    m_sp = jax.random.normal(keys[0], (R, T, 1, K), jnp.float32)
    Ls = 0.1 * jax.random.normal(keys[1], (R, T, K, K), jnp.float32)
    S_sp = jnp.einsum("rtab,rtcb->rtac", Ls, Ls) + 0.5 * jnp.eye(K, dtype=jnp.float32)

    # Variational marginals / conditional params at the quadrature nodes
    m_qu = jax.random.normal(keys[2], (R, nLeg, 1, K), jnp.float32)
    Lq = 0.1 * jax.random.normal(keys[3], (R, nLeg, K, K), jnp.float32)
    S_qu = jnp.einsum("rqab,rqcb->rqac", Lq, Lq) + 0.5 * jnp.eye(K, dtype=jnp.float32)
    A_qu = 0.1 * jax.random.normal(keys[4], (R, nLeg, K, K), jnp.float32)
    b_qu = 0.1 * jax.random.normal(keys[5], (R, nLeg, 1, K), jnp.float32)

    model = GPSDEmodelPallas(nLatent=K, nOut=D, nTrials=R, nObsPerTrial=T,
                             nLeg=nLeg, trLen=trLen, key=keys[6])

    ell_sum, kld, prior_trans, prior_map = model.forward(m_sp, S_sp, m_qu, S_qu, A_qu, b_qu)
    jax.block_until_ready((ell_sum, kld, prior_trans, prior_map))

    assert all(bool(jnp.isfinite(v)) for v in (ell_sum, kld, prior_trans, prior_map))
    print("KERNEL_OK")
</pallas_src>

<mosaic_0001>
module attributes {stable_mosaic.version = 11 : i64} {
  func.func @_gpsde_trial_kernel(%arg0: i32, %arg1: memref<1x21x8xf32, #tpu.memory_space<vmem>>, %arg2: memref<1x16x8xf32, #tpu.memory_space<vmem>>, %arg3: memref<32x21xf32, #tpu.memory_space<vmem>>, %arg4: memref<16x1xf32, #tpu.memory_space<vmem>>, %arg5: memref<1x4x8xf32, #tpu.memory_space<vmem>>, %arg6: memref<1x4x4x8xf32, #tpu.memory_space<vmem>>, %arg7: memref<1x4x4x8xf32, #tpu.memory_space<vmem>>, %arg8: memref<1x4x8xf32, #tpu.memory_space<vmem>>, %arg9: memref<4x4x1xf32, #tpu.memory_space<vmem>>, %arg10: memref<4x1xf32, #tpu.memory_space<vmem>>, %arg11: memref<1x8xf32, #tpu.memory_space<vmem>>, %arg12: memref<1x1x1xf32, #tpu.memory_space<vmem>>, %arg13: memref<1x1x1xf32, #tpu.memory_space<vmem>>) attributes {dimension_semantics = [#tpu.dimension_semantics<parallel>], iteration_bounds = array<i64: 2>, scalar_prefetch = 0 : i64, scratch_operands = 0 : i64, tpu.core_type = #tpu.core_type<tc>, window_params = [{transform_indices = @transform_0, window_bounds = array<i64: 1, 21, 8>}, {transform_indices = @transform_1, window_bounds = array<i64: 1, 16, 8>}, {pipeline_mode = #tpu.pipeline_mode<synchronous>, transform_indices = @transform_2, window_bounds = array<i64: 32, 21>}, {pipeline_mode = #tpu.pipeline_mode<synchronous>, transform_indices = @transform_3, window_bounds = array<i64: 16, 1>}, {transform_indices = @transform_4, window_bounds = array<i64: 1, 4, 8>}, {transform_indices = @transform_5, window_bounds = array<i64: 1, 4, 4, 8>}, {transform_indices = @transform_6, window_bounds = array<i64: 1, 4, 4, 8>}, {transform_indices = @transform_7, window_bounds = array<i64: 1, 4, 8>}, {pipeline_mode = #tpu.pipeline_mode<synchronous>, transform_indices = @transform_8, window_bounds = array<i64: 4, 4, 1>}, {pipeline_mode = #tpu.pipeline_mode<synchronous>, transform_indices = @transform_9, window_bounds = array<i64: 4, 1>}, {pipeline_mode = #tpu.pipeline_mode<synchronous>, transform_indices = @transform_10, window_bounds = array<i64: 1, 8>}, {transform_indices = @transform_11, window_bounds = array<i64: 1, 1, 1>}, {transform_indices = @transform_12, window_bounds = array<i64: 1, 1, 1>}]} {
    %c0 = arith.constant 0 : index
    %c0_0 = arith.constant 0 : index
    %c0_1 = arith.constant 0 : index
    %0 = vector.load %arg1[%c0, %c0_0, %c0_1] : memref<1x21x8xf32, #tpu.memory_space<vmem>>, vector<1x21x8xf32>
    %1 = vector.shape_cast %0 : vector<1x21x8xf32> to vector<21x8xf32>
    %c0_2 = arith.constant 0 : index
    %c0_3 = arith.constant 0 : index
    %c0_4 = arith.constant 0 : index
    %2 = vector.load %arg2[%c0_2, %c0_3, %c0_4] : memref<1x16x8xf32, #tpu.memory_space<vmem>>, vector<1x16x8xf32>
    %3 = vector.shape_cast %2 : vector<1x16x8xf32> to vector<16x8xf32>
    %c0_5 = arith.constant 0 : index
    %c0_6 = arith.constant 0 : index
    %4 = vector.load %arg3[%c0_5, %c0_6] : memref<32x21xf32, #tpu.memory_space<vmem>>, vector<32x21xf32>
    %c0_7 = arith.constant 0 : index
    %c0_8 = arith.constant 0 : index
    %5 = vector.load %arg4[%c0_7, %c0_8] : memref<16x1xf32, #tpu.memory_space<vmem>>, vector<16x1xf32>
    %cst = arith.constant dense<0.000000e+00> : vector<32x8xf32>
    %6 = tpu.matmul %4, %1, %cst {dimension_numbers = #tpu.dot_dimension_numbers<[1], [0], [0], [1], [0, 0, 1, 1], [], []>} : vector<32x21xf32>, vector<21x8xf32>, vector<32x8xf32> -> vector<32x8xf32>
    %7 = vector.extract_strided_slice %6 {offsets = [0, 0], sizes = [16, 8], strides = [1, 1]} : vector<32x8xf32> to vector<16x8xf32>
    %8 = vector.extract_strided_slice %6 {offsets = [16, 0], sizes = [16, 8], strides = [1, 1]} : vector<32x8xf32> to vector<16x8xf32>
    %cst_9 = arith.constant 0.000000e+00 : f32
    %9 = vector.broadcast %cst_9 : f32 to vector<16x1xf32>
    %10 = arith.subf %9, %5 : vector<16x1xf32>
    %11 = math.exp %10 : vector<16x1xf32>
    %12 = arith.subf %3, %7 : vector<16x8xf32>
    %13 = arith.mulf %12, %12 : vector<16x8xf32>
    %14 = arith.addf %13, %8 : vector<16x8xf32>
    %15 = vector.broadcast %11 : vector<16x1xf32> to vector<16x8xf32>
    %16 = arith.mulf %14, %15 : vector<16x8xf32>
    %17 = vector.shape_cast %5 : vector<16x1xf32> to vector<1x16x1xf32>
    %cst_10 = arith.constant dense<0.000000e+00> : vector<1xf32>
    %18 = vector.multi_reduction <add>, %17, %cst_10 [1, 2] : vector<1x16x1xf32> to vector<1xf32>
    %19 = vector.shape_cast %18 : vector<1xf32> to vector<1x1x1xf32>
    %20 = vector.extract %19[0, 0, 0] : f32 from vector<1x1x1xf32>
    %cst_11 = arith.constant 5.000000e-01 : f32
    %21 = arith.mulf %cst_11, %20 : f32
    %cst_12 = arith.constant -14.7030163 : f32
    %22 = arith.subf %cst_12, %21 : f32
    %cst_13 = arith.constant 8.000000e+00 : f32
    %23 = arith.mulf %cst_13, %22 : f32
    %24 = vector.shape_cast %16 : vector<16x8xf32> to vector<1x16x8xf32>
    %cst_14 = arith.constant dense<0.000000e+00> : vector<1xf32>
    %25 = vector.multi_reduction <add>, %24, %cst_14 [1, 2] : vector<1x16x8xf32> to vector<1xf32>
    %26 = vector.shape_cast %25 : vector<1xf32> to vector<1x1x1xf32>
    %27 = vector.extract %26[0, 0, 0] : f32 from vector<1x1x1xf32>
    %28 = vector.broadcast %27 : f32 to vector<1x1xf32>
    %cst_15 = arith.constant 5.000000e-01 : f32
    %29 = vector.broadcast %cst_15 : f32 to vector<1x1xf32>
    %30 = arith.mulf %29, %28 : vector<1x1xf32>
    %31 = vector.broadcast %23 : f32 to vector<1x1xf32>
    %32 = arith.subf %31, %30 : vector<1x1xf32>
    %c0_16 = arith.constant 0 : index
    %c0_17 = arith.constant 0 : index
    %c0_18 = arith.constant 0 : index
    %33 = vector.load %arg12[%c0_16, %c0_17, %c0_18] : memref<1x1x1xf32, #tpu.memory_space<vmem>>, vector<1x1x1xf32>
    %34 = vector.shape_cast %33 : vector<1x1x1xf32> to vector<1x1xf32>
    %35 = vector.shape_cast %32 : vector<1x1xf32> to vector<1x1x1xf32>
    tpu.vector_store %arg12[%c0_16, %c0_17, %c0_18], %35 {strides = array<i32>} : memref<1x1x1xf32, #tpu.memory_space<vmem>>, vector<1x1x1xf32>,
    %c0_19 = arith.constant 0 : index
    %c0_20 = arith.constant 0 : index
    %c0_21 = arith.constant 0 : index
    %36 = vector.load %arg5[%c0_19, %c0_20, %c0_21] : memref<1x4x8xf32, #tpu.memory_space<vmem>>, vector<1x4x8xf32>
    %37 = vector.shape_cast %36 : vector<1x4x8xf32> to vector<4x8xf32>
    %c0_22 = arith.constant 0 : index
    %c0_23 = arith.constant 0 : index
    %c0_24 = arith.constant 0 : index
    %c0_25 = arith.constant 0 : index
    %38 = vector.load %arg6[%c0_22, %c0_23, %c0_24, %c0_25] : memref<1x4x4x8xf32, #tpu.memory_space<vmem>>, vector<1x4x4x8xf32>
    %39 = vector.shape_cast %38 : vector<1x4x4x8xf32> to vector<4x4x8xf32>
    %c0_26 = arith.constant 0 : index
    %c0_27 = arith.constant 0 : index
    %c0_28 = arith.constant 0 : index
    %c0_29 = arith.constant 0 : index
    %40 = vector.load %arg7[%c0_26, %c0_27, %c0_28, %c0_29] : memref<1x4x4x8xf32, #tpu.memory_space<vmem>>, vector<1x4x4x8xf32>
    %41 = vector.shape_cast %40 : vector<1x4x4x8xf32> to vector<4x4x8xf32>
    %c0_30 = arith.constant 0 : index
    %c0_31 = arith.constant 0 : index
    %c0_32 = arith.constant 0 : index
    %42 = vector.load %arg8[%c0_30, %c0_31, %c0_32] : memref<1x4x8xf32, #tpu.memory_space<vmem>>, vector<1x4x8xf32>
    %43 = vector.shape_cast %42 : vector<1x4x8xf32> to vector<4x8xf32>
    %c0_33 = arith.constant 0 : index
    %c0_34 = arith.constant 0 : index
    %c0_35 = arith.constant 0 : index
    %44 = vector.load %arg9[%c0_33, %c0_34, %c0_35] : memref<4x4x1xf32, #tpu.memory_space<vmem>>, vector<4x4x1xf32>
    %c0_36 = arith.constant 0 : index
    %c0_37 = arith.constant 0 : index
    %45 = vector.load %arg10[%c0_36, %c0_37] : memref<4x1xf32, #tpu.memory_space<vmem>>, vector<4x1xf32>
    %c0_38 = arith.constant 0 : index
    %c0_39 = arith.constant 0 : index
    %46 = vector.load %arg11[%c0_38, %c0_39] : memref<1x8xf32, #tpu.memory_space<vmem>>, vector<1x8xf32>
    %47 = vector.broadcast %44 : vector<4x4x1xf32> to vector<4x4x8xf32>
    %48 = arith.addf %47, %41 : vector<4x4x8xf32>
    %49 = vector.broadcast %45 : vector<4x1xf32> to vector<4x8xf32>
    %50 = arith.subf %49, %43 : vector<4x8xf32>
    %51 = vector.shape_cast %37 : vector<4x8xf32> to vector<1x4x8xf32>
    %52 = vector.broadcast %51 : vector<1x4x8xf32> to vector<4x4x8xf32>
    %53 = arith.mulf %48, %52 : vector<4x4x8xf32>
    %cst_40 = arith.constant dense<0.000000e+00> : vector<4x8xf32>
    %54 = vector.multi_reduction <add>, %53, %cst_40 [1] : vector<4x4x8xf32> to vector<4x8xf32>
    %55 = arith.addf %54, %50 : vector<4x8xf32>
    %56 = arith.mulf %55, %55 : vector<4x8xf32>
    %cst_41 = arith.constant dense<0.000000e+00> : vector<8xf32>
    %57 = vector.multi_reduction <add>, %56, %cst_41 [0] : vector<4x8xf32> to vector<8xf32>
    %58 = vector.shape_cast %57 : vector<8xf32> to vector<1x8xf32>
    %59 = vector.shape_cast %48 : vector<4x4x8xf32> to vector<4x4x1x8xf32>
    %60 = vector.shape_cast %48 : vector<4x4x8xf32> to vector<4x1x4x8xf32>
    %61 = vector.broadcast %59 : vector<4x4x1x8xf32> to vector<4x4x4x8xf32>
    %62 = vector.broadcast %60 : vector<4x1x4x8xf32> to vector<4x4x4x8xf32>
    %63 = arith.mulf %61, %62 : vector<4x4x4x8xf32>
    %cst_42 = arith.constant dense<0.000000e+00> : vector<4x4x8xf32>
    %64 = vector.multi_reduction <add>, %63, %cst_42 [0] : vector<4x4x4x8xf32> to vector<4x4x8xf32>
    %65 = arith.mulf %64, %39 : vector<4x4x8xf32>
    %cst_43 = arith.constant dense<0.000000e+00> : vector<4x8xf32>
    %66 = vector.multi_reduction <add>, %65, %cst_43 [0] : vector<4x4x8xf32> to vector<4x8xf32>
    %cst_44 = arith.constant dense<0.000000e+00> : vector<8xf32>
    %67 = vector.multi_reduction <add>, %66, %cst_44 [0] : vector<4x8xf32> to vector<8xf32>
    %68 = vector.shape_cast %67 : vector<8xf32> to vector<1x8xf32>
    %69 = arith.addf %58, %68 : vector<1x8xf32>
    %cst_45 = arith.constant 5.000000e-01 : f32
    %70 = vector.broadcast %cst_45 : f32 to vector<1x8xf32>
    %71 = arith.mulf %70, %69 : vector<1x8xf32>
    %72 = arith.mulf %71, %46 : vector<1x8xf32>
    %73 = vector.shape_cast %72 : vector<1x8xf32> to vector<1x1x8xf32>
    %cst_46 = arith.constant dense<0.000000e+00> : vector<1xf32>
    %74 = vector.multi_reduction <add>, %73, %cst_46 [1, 2] : vector<1x1x8xf32> to vector<1xf32>
    %75 = vector.shape_cast %74 : vector<1xf32> to vector<1x1x1xf32>
    %76 = vector.extract %75[0, 0, 0] : f32 from vector<1x1x1xf32>
    %77 = vector.broadcast %76 : f32 to vector<1x1xf32>
    %c0_47 = arith.constant 0 : index
    %c0_48 = arith.constant 0 : index
    %c0_49 = arith.constant 0 : index
    %78 = vector.load %arg13[%c0_47, %c0_48, %c0_49] : memref<1x1x1xf32, #tpu.memory_space<vmem>>, vector<1x1x1xf32>
    %79 = vector.shape_cast %78 : vector<1x1x1xf32> to vector<1x1xf32>
    %80 = vector.shape_cast %77 : vector<1x1xf32> to vector<1x1x1xf32>
    tpu.vector_store %arg13[%c0_47, %c0_48, %c0_49], %80 {strides = array<i32>} : memref<1x1x1xf32, #tpu.memory_space<vmem>>, vector<1x1x1xf32>,
    return
  }
  func.func @transform_0(%arg0: i32) -> (i32, i32, i32) {
    %c0_i32 = arith.constant 0 : i32
    %c0_i32_0 = arith.constant 0 : i32
    %c0_i32_1 = arith.constant 0 : i32
    return %arg0, %c0_i32, %c0_i32_0 : i32, i32, i32
  }
  func.func @transform_1(%arg0: i32) -> (i32, i32, i32) {
    %c0_i32 = arith.constant 0 : i32
    %c0_i32_0 = arith.constant 0 : i32
    %c0_i32_1 = arith.constant 0 : i32
    return %arg0, %c0_i32, %c0_i32_0 : i32, i32, i32
  }
  func.func @transform_2(%arg0: i32) -> (i32, i32) {
    %c0_i32 = arith.constant 0 : i32
    %c0_i32_0 = arith.constant 0 : i32
    %c0_i32_1 = arith.constant 0 : i32
    return %c0_i32, %c0_i32_0 : i32, i32
  }
  func.func @transform_3(%arg0: i32) -> (i32, i32) {
    %c0_i32 = arith.constant 0 : i32
    %c0_i32_0 = arith.constant 0 : i32
    %c0_i32_1 = arith.constant 0 : i32
    return %c0_i32, %c0_i32_0 : i32, i32
  }
  func.func @transform_4(%arg0: i32) -> (i32, i32, i32) {
    %c0_i32 = arith.constant 0 : i32
    %c0_i32_0 = arith.constant 0 : i32
    %c0_i32_1 = arith.constant 0 : i32
    return %arg0, %c0_i32, %c0_i32_0 : i32, i32, i32
  }
  func.func @transform_5(%arg0: i32) -> (i32, i32, i32, i32) {
    %c0_i32 = arith.constant 0 : i32
    %c0_i32_0 = arith.constant 0 : i32
    %c0_i32_1 = arith.constant 0 : i32
    %c0_i32_2 = arith.constant 0 : i32
    return %arg0, %c0_i32, %c0_i32_0, %c0_i32_1 : i32, i32, i32, i32
  }
  func.func @transform_6(%arg0: i32) -> (i32, i32, i32, i32) {
    %c0_i32 = arith.constant 0 : i32
    %c0_i32_0 = arith.constant 0 : i32
    %c0_i32_1 = arith.constant 0 : i32
    %c0_i32_2 = arith.constant 0 : i32
    return %arg0, %c0_i32, %c0_i32_0, %c0_i32_1 : i32, i32, i32, i32
  }
  func.func @transform_7(%arg0: i32) -> (i32, i32, i32) {
    %c0_i32 = arith.constant 0 : i32
    %c0_i32_0 = arith.constant 0 : i32
    %c0_i32_1 = arith.constant 0 : i32
    return %arg0, %c0_i32, %c0_i32_0 : i32, i32, i32
  }
  func.func @transform_8(%arg0: i32) -> (i32, i32, i32) {
    %c0_i32 = arith.constant 0 : i32
    %c0_i32_0 = arith.constant 0 : i32
    %c0_i32_1 = arith.constant 0 : i32
    %c0_i32_2 = arith.constant 0 : i32
    return %c0_i32, %c0_i32_0, %c0_i32_1 : i32, i32, i32
  }
  func.func @transform_9(%arg0: i32) -> (i32, i32) {
    %c0_i32 = arith.constant 0 : i32
    %c0_i32_0 = arith.constant 0 : i32
    %c0_i32_1 = arith.constant 0 : i32
    return %c0_i32, %c0_i32_0 : i32, i32
  }
  func.func @transform_10(%arg0: i32) -> (i32, i32) {
    %c0_i32 = arith.constant 0 : i32
    %c0_i32_0 = arith.constant 0 : i32
    %c0_i32_1 = arith.constant 0 : i32
    return %c0_i32, %c0_i32_0 : i32, i32
  }
  func.func @transform_11(%arg0: i32) -> (i32, i32, i32) {
    %c0_i32 = arith.constant 0 : i32
    %c0_i32_0 = arith.constant 0 : i32
    %c0_i32_1 = arith.constant 0 : i32
    return %arg0, %c0_i32, %c0_i32_0 : i32, i32, i32
  }
  func.func @transform_12(%arg0: i32) -> (i32, i32, i32) {
    %c0_i32 = arith.constant 0 : i32
    %c0_i32_0 = arith.constant 0 : i32
    %c0_i32_1 = arith.constant 0 : i32
    return %arg0, %c0_i32, %c0_i32_0 : i32, i32, i32
  }
}

</mosaic_0001>

<bundles_post_ra>
// kernel: _forward_fn.1
= control target key start
LH: loop header
LB: loop body
LE: loop exit
PB: predicated region body
PF: predicated region fallthrough
CT: control target
= control target key end

     0   :  { %s1340_s21 = smov 0   ;;  %s1527_s0 = inlined_call_operand.vmem [shape: f32[2,21,8], index: 0, kind: input, shape index: {}]   ;;  %s1528_s1 = inlined_call_operand.vmem [shape: f32[2,16,8], index: 1, kind: input, shape index: {}]   ;;  %s1529_s2 = inlined_call_operand.vmem [shape: f32[32,21], index: 2, kind: input, shape index: {}]   ;;  %s1530_s3 = inlined_call_operand.vmem [shape: f32[16,1], index: 3, kind: input, shape index: {}]   ;;  %s1531_s4 = inlined_call_operand.vmem [shape: f32[2,4,8], index: 4, kind: input, shape index: {}]   ;;  %s1532_s5 = inlined_call_operand.vmem [shape: f32[2,4,4,8], index: 5, kind: input, shape index: {}]   ;;  %s1533_s6 = inlined_call_operand.vmem [shape: f32[2,4,4,8], index: 6, kind: input, shape index: {}]   ;;  %s1534_s7 = inlined_call_operand.vmem [shape: f32[2,4,8], index: 7, kind: input, shape index: {}]   ;;  %s1535_s8 = inlined_call_operand.vmem [shape: f32[4,4,1], index: 8, kind: input, shape index: {}]   ;;  %s1536_s9 = inlined_call_operand.vmem [shape: f32[4,1], index: 9, kind: input, shape index: {}]   ;;  %s1537_s10 = inlined_call_operand.vmem [shape: f32[1,8], index: 10, kind: input, shape index: {}]   ;;  %s1538_s11 = inlined_call_operand.vmem [shape: f32[2,1,1], index: 11, kind: output, shape index: {0}]   ;;  %s1539_s12 = inlined_call_operand.vmem [shape: f32[2,1,1], index: 12, kind: output, shape index: {1}]  }
   0x1 LB: > { %s1191_s22 = sadd.s32 4294967295, %s1271_s21   ;;  %p1195_p0 = scmp.ge.s32.totalorder %s1271_s21, 1  ;;  %s1271_s21 = sphi %s1340_s21, %s23_s21  }
   0x2   : > { %p413_p1 = scmp.lt.s32.totalorder %s1271_s21, 3 }
   0x4   : > { %p414_p2 = pnand %p1195_p0, %p413_p1 }
   0x5   : > { %p479_p3 = scmp.lt.s32.totalorder (!%p414_p2), %s1191_s22, 1  ;;  %v518_v0 = vld [vmem:[%s1529_s2] sm:$0xff] (!%p414_p2)  ;;  %vm524_vm0 = vcmask (!%p414_p2), 171008   ;;  %v520_v1 = vld [vmem:[%s1529_s2 + $0x10] sm:$0xff] (!%p414_p2)  ;;  %v697_v3 = vld [vmem:[%s1535_s8 + $0x8] sm:$0xf] (!%p414_p2)  ;;  %v808_v27 = vlaneseq (!%p414_p2) }
   0x6   : > { %417 = sbr.rel (%p414_p2) target bundleno = 460 (0x1cc), region = 64  ;;  %1228 = vmatprep.mubr.msk.f32.mxu0 (!%p414_p2), %vm524_vm0, %v518_v0  ;;  %1231 = vmatprep.mubr.msk.f32.mxu1 (!%p414_p2), %vm524_vm0, %v520_v1  ;;  %v695_v2 = vld [vmem:[%s1535_s8] sm:$0xf] (!%p414_p2)  ;;  %v1273_v4 = vmov (!%p414_p2), 0   ;;  %v523_v5 = vld [vmem:[%s1530_s3 + $0x8] sm:$0xff] (!%p414_p2)  ;;  %vm537_vm1 = vcmask (!%p414_p2), 1044480  }
   0x7   : > { %1259 = vset.pattern.permute.xlu0 (!%p414_p2), %v1273_v4  ;;  %1260 = vset.pattern.permute.xlu1 (!%p414_p2), %v1273_v4  ;;  %v627_v6 = vsub.f32 (!%p414_p2), 0.0, %v523_v5  ;;  %v522_v7 = vld [vmem:[%s1530_s3] sm:$0xff] (!%p414_p2)  ;;  %v698_v9 = vld [vmem:[%s1535_s8 + $0xc] sm:$0xf] (!%p414_p2)  ;;  %v521_v19 = vld [vmem:[%s1529_s2 + $0x18] sm:$0xff] (!%p414_p2)  ;;  %vm650_vm2 = vcmask (!%p414_p2), 7168  }
   0x8   : > { %703 = vperm.xlu0 (!%p414_p2), %1259, %v695_v2   ;;  %713 = vperm.xlu1 (!%p414_p2), %1260, %v697_v3   ;;  %v696_v8 = vld [vmem:[%s1535_s8 + $0x4] sm:$0xf] (!%p414_p2)  ;;  %v626_v10 = vsub.f32 (!%p414_p2), 0.0, %v522_v7  ;;  %v699_v17 = vld [vmem:[%s1536_s9] sm:$0xf] (!%p414_p2)  ;;  %v519_v18 = vld [vmem:[%s1529_s2 + $0x8] sm:$0xff] (!%p414_p2) }
   0x9   : > { %v630_v11 = vmul.f32 (!%p414_p2), 1.442695, %v627_v6  ;;  %v651_v22 = vsel (!%p414_p2), %vm650_vm2, %v522_v7, 0.0  ;;  %v652_v23 = vsel (!%p414_p2), %vm650_vm2, %v523_v5, 0.0  ;;  %v1274_v25 = vmov (!%p414_p2), 1966171168  }
   0xa   : > { %v628_v12 = vmul.f32 (!%p414_p2), 1.442695, %v626_v10  ;;  %v653_v24 = vadd.f32 (!%p414_p2), %v652_v23, %v651_v22  ;;  %v806_v26 = vunpack.c.l.s4 (!%p414_p2), %v1274_v25  ;;  %v809_v30 = vshrl.u32 (!%p414_p2), %v808_v27, 7 }
   0xb   : > { %1261 = vpow2.f32 (!%p414_p2), %v630_v11  ;;  %vm735_vm3 = vcmask (!%p414_p2), 60416   ;;  %vm785_vm4 = vcmask (!%p414_p2), 1041409   ;;  %vm788_vm5 = vcmask (!%p414_p2), 1042434  }
   0xc   : > { %708 = vperm.xlu0 (!%p414_p2), %1259, %v696_v8   ;;  %718 = vperm.xlu1 (!%p414_p2), %1260, %v698_v9   ;;  %1263 = vpow2.f32 (!%p414_p2), %v628_v12  ;;  %v807_v29 = vunpack.c.0.s8 (!%p414_p2), %v806_v26  ;;  %v1420_v49 = vsub.s32 (!%p414_p2), 0, %v809_v30  ;;  %vm791_vm6 = vcmask (!%p414_p2), 1043459  }
   0xd   : > { %s1541_s22 = smov (!%p479_p3, %s1191_s22), 1  ;;  %vm666_vm7 = vcmask 64512   ;;  %vm1046_vm8 = vcmask 57344   ;;  %vm683_vm9 = vcmask 0  }
   0xe   : > { %s1242_s17 = smul.u32 24, %s1541_s22  ;;  %s1392_s15 = sshll.u32 %s1541_s22, 4  ;;  %v1399_v34 = vsub.s32 %v807_v29, %v809_v30 }
   0xf   : > { %s502_s18 = scalar_lea.vmem %s1533_s6, %s1392_s15  ;;  %s1199_s19 = sshll.u32 %s1541_s22, 2 }
  0x10   : > { %s483_s26 = scalar_lea.vmem %s1527_s0, %s1242_s17  ;;  %727 = vperm.xlu0 %1259, %v699_v17   ;;  %v690_v31 = vld [vmem:[%s502_s18] sm:$0xf]  ;;  %v691_v33 = vld [vmem:[%s502_s18 + $0x4] sm:$0xf]  ;;  %v692_v37 = vld [vmem:[%s502_s18 + $0x8] sm:$0xf]  ;;  %s492_s24 = scalar_lea.vmem %s1531_s4, %s1199_s19 }
  0x11   : > { %v513_v13 = vld [vmem:[%s483_s26] sm:$0xff]  ;;  %v514_v14 = vld [vmem:[%s483_s26 + $0x8] sm:$0xff]  ;;  %v515_v16 = vld [vmem:[%s483_s26 + $0x10] sm:$0x1f]  ;;  %s506_s27 = scalar_lea.vmem %s1534_s7, %s1199_s19  ;;  %s1493_s30 = scalar_lea.vmem %s1532_s5, %s1392_s15 }
  0x12   : > { %v1234_v15 = vpack.c.bf16 %v514_v14, %v513_v13  ;;  %v685_v41 = vld [vmem:[%s492_s24] sm:$0xf]  ;;  %v693_v44 = vld [vmem:[%s502_s18 + $0xc] sm:$0xf]  ;;  %s488_s16 = scalar_lea.vmem %s1528_s1, %s1392_s15 }
  0x14   : > { %1235 = vmatprep.subr.bf16.mxu0 %v1234_v15  ;;  %1238 = vmatprep.subr.bf16.mxu1 %v1234_v15 }
  0x15   : > { %1237 = vmatpush3.bf16.msra.mxu0 %v1234_v15  ;;  %1240 = vmatpush3.bf16.msra.mxu1 %v1234_v15  ;;  %v1262_v20 = vpop.eup %1261 }
  0x16   : > { %1226 = vmatprep.subr.msk.mxu0 %vm537_vm1, %v515_v16  ;;  %1239 = vmatprep.subr.msk.mxu1 %vm537_vm1, %v515_v16  ;;  %v1264_v21 = vpop.eup %1263 }
  0x17   : > { %645 = vperm.xlu0 %1259, %v1262_v20   ;;  %640 = vperm.xlu1 %1260, %v1264_v21  }
  0x19   : > { %1227 = vmatpush3.msk.msra.mxu0 %vm537_vm1, %v515_v16  ;;  %1241 = vmatpush3.msk.msra.mxu1 %vm537_vm1, %v515_v16 }
  0x1a   : > { %1229 = vmatmul.mubr.msk.f32.vlgmr.msra.gmra.mrb[0].mxu0 %vm524_vm0, %v519_v18  ;;  %1232 = vmatmul.mubr.msk.f32.vlgmr.msra.gmra.mrb[0].mxu1 %vm524_vm0, %v521_v19 }
  0x3b   : > { %654 = vadd.xlane.f32.xlu1 %v653_v24 }
  0x87   : > { %v704_v28 = vpop.permute.xlu0 %703  ;;  %v714_v36 = vpop.permute.xlu1 %713 }
  0x88   : > { %v1401_v35 = vadd.f32 %v704_v28, %v690_v31  ;;  %v1410_v39 = vadd.f32 %v714_v36, %v692_v37 }
  0x8a   : > { %v811_v40 = vrot.slane %v1401_v35, %v1399_v34  ;;  %v859_v45 = vrot.slane %v1410_v39, %v1399_v34  ;;  %v731_v52 = vmul.f32 %v1401_v35, %v685_v41  ;;  %v733_v55 = vmul.f32 %v1410_v39, %v685_v41 }
  0x8b   : > { %v709_v32 = vpop.permute.xlu0 %708  ;;  %v719_v43 = vpop.permute.xlu1 %718 }
  0x8c   : > { %v1403_v38 = vadd.f32 %v709_v32, %v691_v33  ;;  %v812_v46 = vcombine.high %v811_v40, %v811_v40  ;;  %v819_v47 = vrot.slane %v811_v40, %v1399_v34  ;;  %v1422_v50 = vadd.f32 %v719_v43, %v693_v44 }
  0x8d   : > { %v860_v53 = vcombine.high %v859_v45, %v859_v45  ;;  %v867_v54 = vrot.slane %v859_v45, %v1399_v34  ;;  %v736_v0 = vsel %vm735_vm3, %v731_v52, 0.0  ;;  %v750_v4 = vsel %vm735_vm3, %v733_v55, 0.0 }
  0x8e   : > { %v835_v42 = vrot.slane %v1403_v38, %v1399_v34  ;;  %v732_v48 = vmul.f32 %v1403_v38, %v685_v41  ;;  %v826_v56 = vrot.slane %v812_v46, %v1399_v34  ;;  %v827_v57 = vcombine.high %v819_v47, %v819_v47 }
  0x8f   : > { %v904_v59 = vrot.slane %v819_v47, %v1420_v49  ;;  %v883_v61 = vrot.slane %v1422_v50, %v1399_v34  ;;  %v734_v63 = vmul.f32 %v1422_v50, %v685_v41  ;;  %v874_v1 = vrot.slane %v860_v53, %v1399_v34 }
  0x90   : > { %v836_v51 = vcombine.high %v835_v42, %v835_v42  ;;  %v743_v58 = vsel %vm735_vm3, %v732_v48, 0.0  ;;  %v843_v60 = vrot.slane %v835_v42, %v1399_v34  ;;  %v875_v2 = vcombine.high %v867_v54, %v867_v54 }
  0x91   : > { %v744_v3 = vrot.slane %v743_v58, 4  ;;  %v828_v5 = vcombine.high %v826_v56, %v826_v56  ;;  %v908_v6 = vrot.slane %v826_v56, %v1420_v49  ;;  %v912_v7 = vrot.slane %v827_v57, %v1420_v49 }
  0x92   : > { %v850_v62 = vrot.slane %v836_v51, %v1399_v34  ;;  %v936_v8 = vrot.slane %v867_v54, %v1420_v49  ;;  %v981_v9 = vmul.f32 %v904_v59, %v1401_v35  ;;  %v876_v10 = vcombine.high %v874_v1, %v874_v1 }
  0x93   : > { %v851_v11 = vcombine.high %v843_v60, %v843_v60  ;;  %v884_v12 = vcombine.high %v883_v61, %v883_v61  ;;  %v920_v13 = vrot.slane %v843_v60, %v1420_v49  ;;  %v751_v15 = vrot.slane %v750_v4, 4 }
  0x94   : > { %v924_v14 = vrot.slane %v850_v62, %v1420_v49  ;;  %v757_v16 = vsel %vm735_vm3, %v734_v63, 0.0  ;;  %v940_v17 = vrot.slane %v874_v1, %v1420_v49  ;;  %v944_v18 = vrot.slane %v875_v2, %v1420_v49  ;;  %v694_v63 = vld [vmem:[%s506_s27] sm:$0xf]  ;;  %s509_s27 = scalar_lea.vmem %s1538_s11, %s1541_s22 }
  0x95   : > { %v737_v19 = vrot.slane %v736_v0, 4  ;;  %v745_v20 = vadd.f32 %v744_v3, %v743_v58  ;;  %v916_v21 = vrot.slane %v828_v5, %v1420_v49  ;;  %v982_v22 = vmul.f32 %v908_v6, %v1401_v35 }
  0x96   : > { %v989_v23 = vmul.f32 %v936_v8, %v1410_v39  ;;  %v852_v24 = vcombine.high %v850_v62, %v850_v62  ;;  %v983_v25 = vmul.f32 %v912_v7, %v1401_v35  ;;  %v928_v26 = vrot.slane %v851_v11, %v1420_v49  ;;  %v728_v62 = vpop.permute.xlu0 %727 }
  0x97   : > { %v891_v27 = vrot.slane %v883_v61, %v1399_v34  ;;  %v758_v28 = vrot.slane %v757_v16, 4  ;;  %v985_v29 = vmul.f32 %v920_v13, %v1403_v38  ;;  %v986_v30 = vmul.f32 %v924_v14, %v1403_v38 }
  0x98   : > { %v898_v31 = vrot.slane %v884_v12, %v1399_v34  ;;  %v752_v32 = vadd.f32 %v751_v15, %v750_v4  ;;  %v997_v33 = vsel %vm735_vm3, %v981_v9, 0.0  ;;  %v948_v36 = vrot.slane %v876_v10, %v1420_v49 }
  0x99   : > { %v738_v37 = vadd.f32 %v737_v19, %v736_v0  ;;  %v746_v40 = vrot.slane %v745_v20, 2  ;;  %v1004_v41 = vsel %vm735_vm3, %v982_v22, 0.0  ;;  %v990_v42 = vmul.f32 %v940_v17, %v1410_v39 }
  0x9a   : > { %v991_v43 = vmul.f32 %v944_v18, %v1410_v39  ;;  %v932_v44 = vrot.slane %v852_v24, %v1420_v49  ;;  %v987_v45 = vmul.f32 %v928_v26, %v1403_v38  ;;  %v899_v46 = vcombine.high %v891_v27, %v891_v27 }
  0x9b   : > { %v952_v34 = vrot.slane %v891_v27, %v1420_v49  ;;  %v759_v47 = vadd.f32 %v758_v28, %v757_v16  ;;  %v998_v48 = vsel %vm735_vm3, %v985_v29, 0.0  ;;  %v1005_v51 = vsel %vm735_vm3, %v986_v30, 0.0  ;;  %v686_v30 = vld [vmem:[%s1493_s30] sm:$0xf] }
  0x9c   : > { %v956_v52 = vrot.slane %v898_v31, %v1420_v49  ;;  %v753_v53 = vrot.slane %v752_v32, 2  ;;  %v984_v54 = vmul.f32 %v916_v21, %v1401_v35  ;;  %v1000_v55 = vsel %vm735_vm3, %v989_v23, 0.0 }
  0x9d   : > { %v739_v56 = vrot.slane %v738_v37, 2  ;;  %v747_v57 = vadd.f32 %v746_v40, %v745_v20  ;;  %v1011_v58 = vsel %vm735_vm3, %v983_v25, 0.0  ;;  %v1007_v59 = vsel %vm735_vm3, %v990_v42, 0.0 }
  0x9e   : > { %v988_v60 = vmul.f32 %v932_v44, %v1403_v38  ;;  %v900_v61 = vcombine.high %v898_v31, %v898_v31  ;;  %v999_v0 = vadd.f32 %v998_v48, %v997_v33  ;;  %v1006_v1 = vadd.f32 %v1005_v51, %v1004_v41  ;;  %v687_v31 = vld [vmem:[%s1493_s30 + $0x4] sm:$0xf] }
  0x9f   : > { %v1012_v2 = vsel %vm735_vm3, %v987_v45, 0.0  ;;  %v760_v3 = vrot.slane %v759_v47, 2  ;;  %v960_v35 = vrot.slane %v899_v46, %v1420_v49  ;;  %v993_v4 = vmul.f32 %v952_v34, %v1422_v50  ;;  %v688_v34 = vld [vmem:[%s1493_s30 + $0x8] sm:$0xf] }
  0xa0   : > { %v994_v5 = vmul.f32 %v956_v52, %v1422_v50  ;;  %v754_v6 = vadd.f32 %v753_v53, %v752_v32  ;;  %v992_v7 = vmul.f32 %v948_v36, %v1410_v39  ;;  %v730_v8 = vsub.f32 %v728_v62, %v694_v63 }
  0xa1   : > { %v740_v38 = vadd.f32 %v739_v56, %v738_v37  ;;  %v748_v9 = vrot.slane %v747_v57, 1  ;;  %v1018_v10 = vsel %vm735_vm3, %v984_v54, 0.0  ;;  %v1014_v11 = vsel %vm735_vm3, %v991_v43, 0.0 }
  0xa2   : > { %v1013_v12 = vadd.f32 %v1012_v2, %v1011_v58  ;;  %v964_v13 = vrot.slane %v900_v61, %v1420_v49  ;;  %v1019_v14 = vsel %vm735_vm3, %v988_v60, 0.0  ;;  %v1001_v15 = vadd.f32 %v1000_v55, %v999_v0 }
  0xa3   : > { %v1008_v16 = vadd.f32 %v1007_v59, %v1006_v1  ;;  %v761_v17 = vadd.f32 %v760_v3, %v759_v47  ;;  %v995_v18 = vmul.f32 %v960_v35, %v1422_v50  ;;  %v1002_v39 = vsel %vm735_vm3, %v993_v4, 0.0 }
  0xa4   : > { %v1009_v19 = vsel %vm735_vm3, %v994_v5, 0.0  ;;  %v755_v20 = vrot.slane %v754_v6, 1  ;;  %v741_v49 = vrot.slane %v740_v38, 1  ;;  %v749_v21 = vadd.f32 %v748_v9, %v747_v57  ;;  %v689_v57 = vld [vmem:[%s1493_s30 + $0xc] sm:$0xf]  ;;  %s512_s30 = scalar_lea.vmem %s1539_s12, %s1541_s22 }
  0xa5   : > { %v765_v22 = vrot.slane %v730_v8, 1  ;;  %v1021_v23 = vsel %vm735_vm3, %v992_v7, 0.0  ;;  %v1020_v24 = vadd.f32 %v1019_v14, %v1018_v10  ;;  %v996_v25 = vmul.f32 %v964_v13, %v1422_v50 }
  0xa6   : > { %v1003_v26 = vadd.f32 %v1002_v39, %v1001_v15  ;;  %v1010_v27 = vadd.f32 %v1009_v19, %v1008_v16  ;;  %v762_v28 = vrot.slane %v761_v17, 1  ;;  %v1015_v29 = vadd.f32 %v1014_v11, %v1013_v12  ;;  %v517_v39 = vld [vmem:[%s488_s16 + $0x8] sm:$0xff]  ;;  %v516_v19 = vld [vmem:[%s488_s16] sm:$0xff] }
  0xa7   : > { %v1016_v32 = vsel %vm735_vm3, %v995_v18, 0.0  ;;  %v756_v33 = vadd.f32 %v755_v20, %v754_v6  ;;  %v766_v36 = vrot.slane %v730_v8, 2  ;;  %v742_v37 = vadd.f32 %v741_v49, %v740_v38 }
  0xa8   : > { %v773_v40 = vadd.f32 %v765_v22, %v749_v21  ;;  %v767_v41 = vrot.slane %v730_v8, 3  ;;  %v1022_v42 = vadd.f32 %v1021_v23, %v1020_v24  ;;  %v1023_v43 = vsel %vm735_vm3, %v996_v25, 0.0 }
  0xa9   : > { %v763_v44 = vadd.f32 %v762_v28, %v761_v17  ;;  %v1017_v50 = vadd.f32 %v1016_v32, %v1015_v29  ;;  %v1025_v45 = vmul.f32 %v1003_v26, %v686_v30  ;;  %v1026_v46 = vmul.f32 %v1010_v27, %v687_v31  ;;  %v646_v31 = vpop.permute.xlu0 %645 }
  0xaa   : > { %v774_v47 = vadd.f32 %v766_v36, %v756_v33  ;;  %v772_v48 = vadd.f32 %v742_v37, %v730_v8  ;;  %v777_v51 = vmul.f32 %v773_v40, %v773_v40  ;;  %v1024_v52 = vadd.f32 %v1023_v43, %v1022_v42  ;;  %v641_v33 = vpop.permute.xlu1 %640  ;;  %v700_v42 = vld [vmem:[%s1537_s10] sm:$0x1] }
  0xab   : > { %v775_v53 = vadd.f32 %v767_v41, %v763_v44  ;;  %v1027_v54 = vmul.f32 %v1017_v50, %v688_v34  ;;  %v1029_v55 = vsel %vm735_vm3, %v1025_v45, 0.0  ;;  %v1030_v56 = vsel %vm735_vm3, %v1026_v46, 0.0 }
  0xac   : > { %v778_v58 = vmul.f32 %v774_v47, %v774_v47  ;;  %v776_v59 = vmul.f32 %v772_v48, %v772_v48  ;;  %v784_v60 = vrot.slane %v777_v51, 7  ;;  %v1031_v61 = vadd.f32 %v1030_v56, %v1029_v55 }
  0xad   : > { %v779_v62 = vmul.f32 %v775_v53, %v775_v53  ;;  %v1028_v63 = vmul.f32 %v1024_v52, %v689_v57  ;;  %v1032_v0 = vsel %vm735_vm3, %v1027_v54, 0.0 }
  0xae   : > { %v787_v1 = vrot.slane %v778_v58, 6  ;;  %v786_v2 = vsel %vm785_vm4, %v784_v60, %v776_v59  ;;  %v1033_v3 = vadd.f32 %v1032_v0, %v1031_v61 }
  0xaf   : > { %v790_v35 = vrot.slane %v779_v62, 5  ;;  %v1034_v4 = vsel %vm735_vm3, %v1028_v63, 0.0 }
  0xb0   : > { %v789_v5 = vsel %vm788_vm5, %v787_v1, %v786_v2  ;;  %v1035_v6 = vadd.f32 %v1034_v4, %v1033_v3 }
  0xb1   : > { %v792_v7 = vsel %vm791_vm6, %v790_v35, %v789_v5 }
  0xb2   : > { %v794_v8 = vsel %vm735_vm3, %v792_v7, 0.0  ;;  %v1036_v38 = vsel %vm735_vm3, %v1035_v6, 0.0 }
  0xb3   : > { %v795_v9 = vrot.slane %v794_v8, 4  ;;  %v1037_v10 = vrot.slane %v1036_v38, 4 }
  0xb5   : > { %v796_v11 = vadd.f32 %v795_v9, %v794_v8  ;;  %v1038_v12 = vadd.f32 %v1037_v10, %v1036_v38 }
  0xb7   : > { %v797_v13 = vrot.slane %v796_v11, 2  ;;  %v1039_v14 = vrot.slane %v1038_v12, 2 }
  0xb9   : > { %v798_v15 = vadd.f32 %v797_v13, %v796_v11  ;;  %v1040_v16 = vadd.f32 %v1039_v14, %v1038_v12 }
  0xbb   : > { %v799_v17 = vrot.slane %v798_v15, 1  ;;  %v1041_v18 = vrot.slane %v1040_v16, 1 }
  0xbd   : > { %v800_v21 = vadd.f32 %v799_v17, %v798_v15  ;;  %v1042_v22 = vadd.f32 %v1041_v18, %v1040_v16 }
  0xbf   : > { %v1043_v29 = vadd.f32 %v1042_v22, %v800_v21 }
  0xc1   : > { %v1044_v40 = vmul.f32 0.5, %v1043_v29 }
  0xc3   : > { %v1045_v50 = vmul.f32 %v1044_v40, %v700_v42 }
  0xc5   : > { %v1047_v45 = vsel %vm1046_vm8, %v1045_v50, 0.0 }
  0xc8   : > { %v655_v46 = vpop.xlane.xlu1 %654 }
  0xc9   : > { %v656_v34 = vrot.slane %v655_v46, 4 }
  0xcb   : > { %v657_v47 = vadd.f32 %v656_v34, %v655_v46 }
  0xcd   : > { %v658_v48 = vrot.slane %v657_v47, 2 }
  0xcf   : > { %v659_v51 = vadd.f32 %v658_v48, %v657_v47 }
  0xd1   : > { %v660_v52 = vrot.slane %v659_v51, 1 }
  0xd3   : > { %v661_v53 = vadd.f32 %v660_v52, %v659_v51 }
  0xd5   : > { %1243 = vpush %v661_v53 }
  0xed   : > { %v1230_v20 = vpop.f32.mrb[0].mxu0  ;;  %v1233_v49 = vpop.f32.mrb[0].mxu1 }
  0xee   : > { %v633_v23 = vsub.f32 %v517_v39, %v1230_v20  ;;  %v607_v24 = vpop.f32.mrb[1].mxu0  ;;  %v617_v25 = vpop.f32.mrb[1].mxu1 }
  0xef   : > { %v632_v26 = vsub.f32 %v516_v19, %v607_v24 }
  0xf0   : > { %v635_v27 = vmul.f32 %v633_v23, %v633_v23 }
  0xf1   : > { %v634_v28 = vmul.f32 %v632_v26, %v632_v26 }
  0xf2   : > { %v637_v30 = vadd.f32 %v1233_v49, %v635_v27 }
  0xf3   : > { %v636_v32 = vadd.f32 %v634_v28, %v617_v25 }
  0xf4   : > { %v649_v36 = vmul.f32 %v646_v31, %v637_v30 }
  0xf5   : > { %v648_v37 = vmul.f32 %v641_v33, %v636_v32 }
  0xf6   : > { %v668_v41 = vsel %vm666_vm7, %v649_v36, 0.0 }
  0xf7   : > { %v667_v43 = vsel %vm666_vm7, %v648_v37, 0.0 }
  0xf8   : > { %v669_v44 = vadd.f32 %v668_v41, %v667_v43 }
  0xfa   : > { %670 = vadd.xlane.f32.xlu0 %v669_v44 }
  0xfe   : > { %1048 = vadd.xlane.f32.xlu0 %v1047_v45 }
 0x106   : > { %s1244_s18 = spop %1243 }
 0x107   : > { %s663_s19 = smul.f32 0.5, %s1244_s18 }
 0x109   : > { %s664_s20 = ssub.f32 -14.703016, %s663_s19 }
 0x10b   : > { %s665_s23 = smul.f32 8.0, %s664_s20 }
 0x10d   : > { %v681_v5 = vstv %s665_s23 }
 0x187   : > { %v671_v54 = vpop.xlane.xlu0 %670 }
 0x188   : > { %v672_v55 = vrot.slane %v671_v54, 4 }
 0x18a   : > { %v673_v56 = vadd.f32 %v672_v55, %v671_v54 }
 0x18b   : > { %v1049_v57 = vpop.xlane.xlu0 %1048 }
 0x18c   : > { %v674_v58 = vrot.slane %v673_v56, 2  ;;  %v1050_v59 = vrot.slane %v1049_v57, 4 }
 0x18e   : > { %v1051_v60 = vadd.f32 %v1050_v59, %v1049_v57  ;;  %v675_v61 = vadd.f32 %v674_v58, %v673_v56 }
 0x190   : > { %v1052_v62 = vrot.slane %v1051_v60, 2  ;;  %v676_v63 = vrot.slane %v675_v61, 1 }
 0x192   : > { %v1053_v0 = vadd.f32 %v1052_v62, %v1051_v60  ;;  %v677_v1 = vadd.f32 %v676_v63, %v675_v61 }
 0x194   : > { %1245 = vpush %v677_v1  ;;  %v1054_v2 = vrot.slane %v1053_v0, 1 }
 0x196   : > { %v1055_v3 = vadd.f32 %v1054_v2, %v1053_v0 }
 0x198   : > { %1247 = vpush %v1055_v3 }
 0x1c5   : > { %s1246_s24 = spop %1245 }
 0x1c6   : > { %v679_v35 = vstv %s1246_s24 }
 0x1c7   : > { %v680_v4 = vmul.f32 0.5, %v679_v35 }
 0x1c9   : > { %v682_v6 = vsub.f32 %v681_v5, %v680_v4  ;;  %s1248_s13 = spop %1247 }
 0x1ca   : > { %v1057_v7 = vstv %s1248_s13 }
 0x1cb   : > { %684 = vst.msk [vmem:[%s509_s27] sm:$0x1] %vm683_vm9, %v682_v6  ;;  %1058 = vst.msk [vmem:[%s512_s30] sm:$0x1] %vm683_vm9, %v1057_v7 }
 0x1cc PF: > { %s23_s21 = sadd.s32 1, %s1271_s21  }
 0x1cd   : > { %p20_p4 = scmp.ge.s32.totalorder %s23_s21, 4  }
 0x1cf   :  { %22 = sbr.rel (!%p20_p4) target bundleno = 1 (0x1), region = 121 }

</bundles_post_ra>
